<compile_context>
chip_gen: v5e
topology: v5e:2x2
jax: 0.10.0
libtpu: 0.0.40
codegen_flags: <defaults>
</compile_context>

<pallas_src>
import functools

import numpy as np
import jax
import jax.numpy as jnp
from jax.experimental import pallas as pl
from jax.experimental.pallas import tpu as pltpu


def _round_up(x: int, m: int) -> int:
    return ((x + m - 1) // m) * m


def _default_exp_dtype():
    """bf16 exp on bf16-native EUP chips (v6e/v7x); f32 elsewhere (v5e, v4, CPU)."""
    try:
        kind = jax.devices()[0].device_kind.lower()
    except Exception:
        return jnp.float32
    if ("v6" in kind) or ("v7" in kind):
        return jnp.bfloat16
    return jnp.float32


# ----------------------------- Pallas kernel ------------------------------ #

def _cost_kernel(x_ref, w_ref, out_ref, *, segments, exp_dtype):
    """x_ref: [bn, Ctot] logits (heads concatenated along lanes);
    w_ref:  [Ctot, T_pad] bf16 weight-baked negated one-hot;
    out_ref:[bn, T_pad] f32 cost tile."""
    x = x_ref[...].astype(jnp.float32)                        # [bn, Ctot]
    col = jax.lax.broadcasted_iota(jnp.int32, x.shape, 1)     # lane index
    neg = jnp.float32(-1e30)

    # Three masked row-max reduces (XLU), selected into a per-column segment max.
    seg_masks = []
    seg_max = jnp.zeros_like(x)
    for lo, hi in segments:                                   # static 3-way unroll
        mask = (col >= lo) & (col < hi)
        seg_masks.append(mask)
        m = jnp.max(jnp.where(mask, x, neg), axis=-1, keepdims=True)  # [bn, 1]
        seg_max = jnp.where(mask, m, seg_max)

    # ONE exp pass over the whole tile (EUP is the binding unit here).
    e = jnp.exp((x - seg_max).astype(exp_dtype))              # [bn, Ctot]

    # Three masked lane sums -> per-column reciprocal (EUP), one multiply.
    inv = jnp.zeros_like(x)
    zero_e = jnp.zeros_like(e)
    for mask in seg_masks:
        s = jnp.sum(jnp.where(mask, e, zero_e).astype(jnp.float32),
                    axis=-1, keepdims=True)                   # f32 accumulation
        inv = jnp.where(mask, pl.reciprocal(s, approx=True), inv)

    if jnp.dtype(exp_dtype) == jnp.dtype(jnp.bfloat16):
        prob = e * inv.astype(jnp.bfloat16)                   # bf16 VPU (v6e/v7x)
    else:
        prob = (e * inv).astype(jnp.bfloat16)                 # f32 VPU (v5e etc.)

    # Single MXU matmul: gather + per-head weighting + negation baked into w.
    out_ref[...] = jnp.dot(prob, w_ref[...], preferred_element_type=jnp.float32)


def _weighted_onehot(ids, num_classes, weight, t_pad):
    """[num_classes, t_pad] f32 with -weight at (ids[t], t), zero elsewhere."""
    ids = ids.astype(jnp.int32)
    t = int(ids.shape[0])
    iota = jax.lax.broadcasted_iota(jnp.int32, (num_classes, t), 0)
    oh = (iota == ids[None, :]).astype(jnp.float32) * (-jnp.float32(1.0) * weight)
    if t_pad > t:
        oh = jnp.pad(oh, ((0, 0), (0, t_pad - t)))
    return oh


@functools.partial(jax.jit, static_argnames=("block_n",))
def compute_cost_matrix(pred_disease_logits, pred_organ_logits, pred_location_logits,
                        tgt_disease_ids, tgt_organ_ids, tgt_location_ids,
                        cost_disease=1.0, cost_organ=1.0, cost_location=1.0,
                        block_n=1024):
    """Returns the PADDED cost matrix [N_pad, T_pad] (float32). Caller slices
    [:B*Q, :T] on the host (the result is host-consumed by the Hungarian solve)."""
    B, Q, Cd = pred_disease_logits.shape
    Co = int(pred_organ_logits.shape[-1])
    Cl = int(pred_location_logits.shape[-1])
    Ctot = Cd + Co + Cl
    N = B * Q
    T = int(tgt_disease_ids.shape[0])

    # Lane-dense output: pad T to a multiple of 128.
    T_pad = max(128, _round_up(T, 128))

    in_dtype = pred_disease_logits.dtype
    itemsize = jnp.dtype(in_dtype).itemsize
    # Sublane multiple matches packed-dtype minimum tile (8 f32 / 16 bf16 / 32 i8).
    sub = {4: 8, 2: 16, 1: 32}.get(itemsize, 8)

    # Row tile: big (amortize ~0.35us/step), but split into >=~4 steps when N is
    # large so the "parallel" axis can shard across both v7x TensorCores.
    bn = _round_up(min(block_n, max(N, sub)), sub)
    if N >= 2 * sub:
        bn = min(bn, _round_up(-(-N // 4), sub))

    # VMEM guard (v7x: 64 MiB physical / 32 MiB default scoped): keep the
    # double-buffered I/O + softmax temporaries comfortably under budget.
    def _vmem_footprint(b):
        return (2 * b * Ctot * itemsize      # logits tiles (x2 buffers)
                + 2 * Ctot * T_pad * 2       # bf16 weight slab (x2 buffers)
                + 2 * b * T_pad * 4          # f32 output tiles (x2 buffers)
                + 8 * b * Ctot * 4)          # softmax intermediates (rough)
    while _vmem_footprint(bn) > (12 << 20) and bn > sub:
        bn = max(sub, _round_up(bn // 2, sub))

    N_pad = _round_up(N, bn)

    # Fused logits matrix [N_pad, Ctot]; cast to f32 happens in-kernel.
    # Zero-padded rows give finite softmax values and are sliced off on host.
    # TODO(synk): passing the three heads as separate kernel inputs would avoid
    # this small wrapper-side concat/pad round trip, but would triple the exp
    # vreg work (each head pads to 128 lanes) — the single-exp fused layout wins.
    logits = jnp.concatenate(
        [pred_disease_logits.reshape(N, Cd),
         pred_organ_logits.reshape(N, Co),
         pred_location_logits.reshape(N, Cl)], axis=-1)
    if N_pad != N:
        logits = jnp.pad(logits, ((0, N_pad - N), (0, 0)))

    # Combined weight-baked negated one-hot [Ctot, T_pad], bf16.
    # NOTE: out-of-range target ids would yield an all-zero column (cost 0);
    # the matcher asserts id validity upstream.
    w = jnp.concatenate(
        [_weighted_onehot(tgt_disease_ids, Cd, cost_disease, T_pad),
         _weighted_onehot(tgt_organ_ids, Co, cost_organ, T_pad),
         _weighted_onehot(tgt_location_ids, Cl, cost_location, T_pad)],
        axis=0).astype(jnp.bfloat16)

    segments = ((0, Cd), (Cd, Cd + Co), (Cd + Co, Ctot))
    kernel = functools.partial(_cost_kernel, segments=segments,
                               exp_dtype=_default_exp_dtype())

    flops = 2 * N_pad * Ctot * T_pad
    transcendentals = N_pad * Ctot + 3 * N_pad           # one exp pass + 3 recips/row
    bytes_accessed = int(N_pad * Ctot * itemsize + Ctot * T_pad * 2 + N_pad * T_pad * 4)

    C_pad = pl.pallas_call(
        kernel,
        out_shape=jax.ShapeDtypeStruct((N_pad, T_pad), jnp.float32),
        grid=(N_pad // bn,),
        in_specs=[
            pl.BlockSpec((bn, Ctot), lambda i: (i, 0)),      # row tile of logits
            pl.BlockSpec((Ctot, T_pad), lambda i: (0, 0)),   # grid-invariant weights
        ],
        out_specs=pl.BlockSpec((bn, T_pad), lambda i: (i, 0)),
        compiler_params=pltpu.CompilerParams(
            dimension_semantics=("parallel",)),
        cost_estimate=pl.CostEstimate(flops=int(flops),
                                      transcendentals=int(transcendentals),
                                      bytes_accessed=bytes_accessed),
    )(logits, w)

    return C_pad


# ---------------- Hungarian assignment (host side, sequential) ------------- #
# TODO(synk): linear_sum_assignment is an inherently sequential combinatorial
# algorithm with no clean Pallas/TPU equivalent; it runs on host numpy.

def linear_sum_assignment_np(cost):
    cost = np.asarray(cost, dtype=np.float64)
    transposed = False
    if cost.shape[0] > cost.shape[1]:
        cost = cost.T
        transposed = True
    n, m = cost.shape
    INF = float("inf")
    u = [0.0] * (n + 1)
    v = [0.0] * (m + 1)
    p = [0] * (m + 1)      # p[j] = row matched to column j (1-indexed), 0 if free
    way = [0] * (m + 1)
    for i in range(1, n + 1):
        p[0] = i
        j0 = 0
        minv = [INF] * (m + 1)
        used = [False] * (m + 1)
        while True:
            used[j0] = True
            i0 = p[j0]
            delta = INF
            j1 = 0
            for j in range(1, m + 1):
                if not used[j]:
                    cur = cost[i0 - 1][j - 1] - u[i0] - v[j]
                    if cur < minv[j]:
                        minv[j] = cur
                        way[j] = j0
                    if minv[j] < delta:
                        delta = minv[j]
                        j1 = j
            for j in range(m + 1):
                if used[j]:
                    u[p[j]] += delta
                    v[j] -= delta
                else:
                    minv[j] -= delta
            j0 = j1
            if p[j0] == 0:
                break
        while j0 != 0:
            j1 = way[j0]
            p[j0] = p[j1]
            j0 = j1
    row_ind, col_ind = [], []
    for j in range(1, m + 1):
        if p[j] != 0:
            row_ind.append(p[j] - 1)
            col_ind.append(j - 1)
    row_ind = np.asarray(row_ind, dtype=np.int64)
    col_ind = np.asarray(col_ind, dtype=np.int64)
    if transposed:
        row_ind, col_ind = col_ind, row_ind
    order = np.argsort(row_ind)
    return row_ind[order], col_ind[order]


# ------------------------------ Matcher module ----------------------------- #

class HungarianMatcher:
    def __init__(self, cost_disease: float = 1, cost_organ: float = 1, cost_location: float = 1):
        self.cost_disease = cost_disease
        self.cost_organ = cost_organ
        self.cost_location = cost_location
        assert cost_disease != 0 or cost_organ != 0 or cost_location != 0, "all costs cant be 0"

    def __call__(self, outputs, targets):
        bs, num_queries = outputs["pred_disease_logits"].shape[:2]
        Cd = int(outputs["pred_disease_logits"].shape[-1])
        Co = int(outputs["pred_organ_logits"].shape[-1])
        Cl = int(outputs["pred_location_logits"].shape[-1])

        tgt_disease_ids = jnp.concatenate([v["diseases"] for v in targets])
        tgt_organ_ids = jnp.concatenate([v["organs"] for v in targets])
        tgt_location_ids = jnp.concatenate([v["locations"] for v in targets])

        N = bs * num_queries
        T = int(tgt_disease_ids.shape[0])

        # Out-of-range ids would silently produce a zero-cost column; assert here.
        if T > 0:
            assert int(jnp.max(tgt_disease_ids)) < Cd, "disease id out of range"
            assert int(jnp.max(tgt_organ_ids)) < Co, "organ id out of range"
            assert int(jnp.max(tgt_location_ids)) < Cl, "location id out of range"

        C_pad = compute_cost_matrix(
            outputs["pred_disease_logits"],
            outputs["pred_organ_logits"],
            outputs["pred_location_logits"],
            tgt_disease_ids, tgt_organ_ids, tgt_location_ids,
            self.cost_disease, self.cost_organ, self.cost_location,
        )
        C_pad = jax.block_until_ready(C_pad)
        # Slice + reshape on the HOST — the result feeds the host Hungarian solve,
        # so a device-side slice of the padded slab would be wasted HBM traffic.
        C_np = np.asarray(C_pad)[:N, :T].reshape(bs, num_queries, T)

        sizes = [int(v["diseases"].shape[0]) for v in targets]
        splits = np.cumsum(sizes)[:-1]
        indices = []
        for i, c in enumerate(np.split(C_np, splits, axis=-1)):
            indices.append(linear_sum_assignment_np(c[i]))
        return [(np.asarray(i, dtype=np.int64), np.asarray(j, dtype=np.int64))
                for i, j in indices], C_np


# ----------------------------------- Main ---------------------------------- #

if __name__ == "__main__":
    key = jax.random.PRNGKey(0)
    B, Q = 2, 8
    NUM_DISEASES, NUM_ORGANS, NUM_LOCATIONS = 8, 5, 6  # logits have +1 "no object" class
    sizes = [3, 5]  # num target diseases per batch element

    k = jax.random.split(key, 8)
    outputs = {
        "pred_disease_logits": jax.random.normal(k[0], (B, Q, NUM_DISEASES + 1), jnp.float32),
        "pred_organ_logits": jax.random.normal(k[1], (B, Q, NUM_ORGANS + 1), jnp.float32),
        "pred_location_logits": jax.random.normal(k[2], (B, Q, NUM_LOCATIONS + 1), jnp.float32),
    }
    targets = []
    for bi, sz in enumerate(sizes):
        kk = jax.random.split(k[3 + bi], 3)
        targets.append({
            "diseases": jax.random.randint(kk[0], (sz,), 0, NUM_DISEASES, jnp.int32),
            "organs": jax.random.randint(kk[1], (sz,), 0, NUM_ORGANS, jnp.int32),
            "locations": jax.random.randint(kk[2], (sz,), 0, NUM_LOCATIONS, jnp.int32),
        })

    matcher = HungarianMatcher(cost_disease=1.0, cost_organ=1.0, cost_location=1.0)
    indices, C = matcher(outputs, targets)

    # Sanity check of the kernel-produced cost matrix against a pure-JAX reference.
    def ref_cost():
        dis = jax.nn.softmax(outputs["pred_disease_logits"].reshape(B * Q, -1), axis=-1)
        org = jax.nn.softmax(outputs["pred_organ_logits"].reshape(B * Q, -1), axis=-1)
        loc = jax.nn.softmax(outputs["pred_location_logits"].reshape(B * Q, -1), axis=-1)
        td = jnp.concatenate([t["diseases"] for t in targets])
        to = jnp.concatenate([t["organs"] for t in targets])
        tl = jnp.concatenate([t["locations"] for t in targets])
        c = -(dis[:, td] + org[:, to] + loc[:, tl])
        return c.reshape(B, Q, -1)

    ref = np.asarray(jax.block_until_ready(ref_cost()))
    # bf16 MXU operands (+ optional bf16 exp) + approx reciprocal ⇒ ~1e-3 abs error.
    assert np.allclose(np.asarray(C), ref, rtol=1e-2, atol=1e-2), \
        np.max(np.abs(np.asarray(C) - ref))

    # Basic structural checks on the assignment output.
    for (i_idx, j_idx), sz in zip(indices, sizes):
        assert len(i_idx) == len(j_idx) == min(Q, sz)
        assert len(set(i_idx.tolist())) == len(i_idx)
        assert len(set(j_idx.tolist())) == len(j_idx)

    print("KERNEL_OK")
</pallas_src>

<mosaic_0001>
module attributes {stable_mosaic.version = 11 : i64} {
  func.func @_cost_kernel(%arg0: i32, %arg1: memref<8x22xf32, #tpu.memory_space<vmem>>, %arg2: memref<22x128xbf16, #tpu.memory_space<vmem>>, %arg3: memref<8x128xf32, #tpu.memory_space<vmem>>) attributes {dimension_semantics = [#tpu.dimension_semantics<parallel>], iteration_bounds = array<i64: 2>, scalar_prefetch = 0 : i64, scratch_operands = 0 : i64, tpu.core_type = #tpu.core_type<tc>, window_params = [{transform_indices = @transform_0, window_bounds = array<i64: 8, 22>}, {pipeline_mode = #tpu.pipeline_mode<synchronous>, transform_indices = @transform_1, window_bounds = array<i64: 22, 128>}, {transform_indices = @transform_2, window_bounds = array<i64: 8, 128>}]} {
    %c0 = arith.constant 0 : index
    %c0_0 = arith.constant 0 : index
    %0 = vector.load %arg1[%c0, %c0_0] : memref<8x22xf32, #tpu.memory_space<vmem>>, vector<8x22xf32>
    %1 = tpu.iota {dimensions = array<i32: 1>} : vector<8x22xi32>
    %cst = arith.constant 0.000000e+00 : f32
    %2 = vector.broadcast %cst : f32 to vector<8x22xf32>
    %c0_i32 = arith.constant 0 : i32
    %3 = vector.broadcast %c0_i32 : i32 to vector<8x22xi32>
    %4 = arith.cmpi sge, %1, %3 : vector<8x22xi32>
    %c9_i32 = arith.constant 9 : i32
    %5 = vector.broadcast %c9_i32 : i32 to vector<8x22xi32>
    %6 = arith.cmpi slt, %1, %5 : vector<8x22xi32>
    %7 = arith.andi %4, %6 : vector<8x22xi1>
    %cst_1 = arith.constant -1.000000e+30 : f32
    %8 = vector.broadcast %cst_1 : f32 to vector<8x22xf32>
    %9 = arith.select %7, %0, %8 : vector<8x22xi1>, vector<8x22xf32>
    %cst_2 = arith.constant dense<0xFF800000> : vector<8xf32>
    %10 = vector.multi_reduction <maximumf>, %9, %cst_2 [1] : vector<8x22xf32> to vector<8xf32>
    %11 = vector.shape_cast %10 : vector<8xf32> to vector<8x1xf32>
    %12 = vector.shape_cast %11 : vector<8x1xf32> to vector<8x1xf32>
    %13 = vector.broadcast %12 : vector<8x1xf32> to vector<8x22xf32>
    %14 = arith.select %7, %13, %2 : vector<8x22xi1>, vector<8x22xf32>
    %c9_i32_3 = arith.constant 9 : i32
    %15 = vector.broadcast %c9_i32_3 : i32 to vector<8x22xi32>
    %16 = arith.cmpi sge, %1, %15 : vector<8x22xi32>
    %c15_i32 = arith.constant 15 : i32
    %17 = vector.broadcast %c15_i32 : i32 to vector<8x22xi32>
    %18 = arith.cmpi slt, %1, %17 : vector<8x22xi32>
    %19 = arith.andi %16, %18 : vector<8x22xi1>
    %cst_4 = arith.constant -1.000000e+30 : f32
    %20 = vector.broadcast %cst_4 : f32 to vector<8x22xf32>
    %21 = arith.select %19, %0, %20 : vector<8x22xi1>, vector<8x22xf32>
    %cst_5 = arith.constant dense<0xFF800000> : vector<8xf32>
    %22 = vector.multi_reduction <maximumf>, %21, %cst_5 [1] : vector<8x22xf32> to vector<8xf32>
    %23 = vector.shape_cast %22 : vector<8xf32> to vector<8x1xf32>
    %24 = vector.shape_cast %23 : vector<8x1xf32> to vector<8x1xf32>
    %25 = vector.broadcast %24 : vector<8x1xf32> to vector<8x22xf32>
    %26 = arith.select %19, %25, %14 : vector<8x22xi1>, vector<8x22xf32>
    %c15_i32_6 = arith.constant 15 : i32
    %27 = vector.broadcast %c15_i32_6 : i32 to vector<8x22xi32>
    %28 = arith.cmpi sge, %1, %27 : vector<8x22xi32>
    %c22_i32 = arith.constant 22 : i32
    %29 = vector.broadcast %c22_i32 : i32 to vector<8x22xi32>
    %30 = arith.cmpi slt, %1, %29 : vector<8x22xi32>
    %31 = arith.andi %28, %30 : vector<8x22xi1>
    %cst_7 = arith.constant -1.000000e+30 : f32
    %32 = vector.broadcast %cst_7 : f32 to vector<8x22xf32>
    %33 = arith.select %31, %0, %32 : vector<8x22xi1>, vector<8x22xf32>
    %cst_8 = arith.constant dense<0xFF800000> : vector<8xf32>
    %34 = vector.multi_reduction <maximumf>, %33, %cst_8 [1] : vector<8x22xf32> to vector<8xf32>
    %35 = vector.shape_cast %34 : vector<8xf32> to vector<8x1xf32>
    %36 = vector.shape_cast %35 : vector<8x1xf32> to vector<8x1xf32>
    %37 = vector.broadcast %36 : vector<8x1xf32> to vector<8x22xf32>
    %38 = arith.select %31, %37, %26 : vector<8x22xi1>, vector<8x22xf32>
    %39 = arith.subf %0, %38 : vector<8x22xf32>
    %40 = math.exp %39 : vector<8x22xf32>
    %cst_9 = arith.constant 0.000000e+00 : f32
    %41 = vector.broadcast %cst_9 : f32 to vector<8x22xf32>
    %cst_10 = arith.constant 0.000000e+00 : f32
    %42 = vector.broadcast %cst_10 : f32 to vector<8x22xf32>
    %43 = arith.select %7, %40, %42 : vector<8x22xi1>, vector<8x22xf32>
    %cst_11 = arith.constant dense<0.000000e+00> : vector<8xf32>
    %44 = vector.multi_reduction <add>, %43, %cst_11 [1] : vector<8x22xf32> to vector<8xf32>
    %45 = vector.shape_cast %44 : vector<8xf32> to vector<8x1xf32>
    %46 = tpu.reciprocal %45 {approx = true} : vector<8x1xf32> -> vector<8x1xf32>
    %47 = vector.shape_cast %46 : vector<8x1xf32> to vector<8x1xf32>
    %48 = vector.broadcast %47 : vector<8x1xf32> to vector<8x22xf32>
    %49 = arith.select %7, %48, %41 : vector<8x22xi1>, vector<8x22xf32>
    %50 = arith.select %19, %40, %42 : vector<8x22xi1>, vector<8x22xf32>
    %cst_12 = arith.constant dense<0.000000e+00> : vector<8xf32>
    %51 = vector.multi_reduction <add>, %50, %cst_12 [1] : vector<8x22xf32> to vector<8xf32>
    %52 = vector.shape_cast %51 : vector<8xf32> to vector<8x1xf32>
    %53 = tpu.reciprocal %52 {approx = true} : vector<8x1xf32> -> vector<8x1xf32>
    %54 = vector.shape_cast %53 : vector<8x1xf32> to vector<8x1xf32>
    %55 = vector.broadcast %54 : vector<8x1xf32> to vector<8x22xf32>
    %56 = arith.select %19, %55, %49 : vector<8x22xi1>, vector<8x22xf32>
    %57 = arith.select %31, %40, %42 : vector<8x22xi1>, vector<8x22xf32>
    %cst_13 = arith.constant dense<0.000000e+00> : vector<8xf32>
    %58 = vector.multi_reduction <add>, %57, %cst_13 [1] : vector<8x22xf32> to vector<8xf32>
    %59 = vector.shape_cast %58 : vector<8xf32> to vector<8x1xf32>
    %60 = tpu.reciprocal %59 {approx = true} : vector<8x1xf32> -> vector<8x1xf32>
    %61 = vector.shape_cast %60 : vector<8x1xf32> to vector<8x1xf32>
    %62 = vector.broadcast %61 : vector<8x1xf32> to vector<8x22xf32>
    %63 = arith.select %31, %62, %56 : vector<8x22xi1>, vector<8x22xf32>
    %64 = arith.mulf %40, %63 : vector<8x22xf32>
    %65 = arith.truncf %64 : vector<8x22xf32> to vector<8x22xbf16>
    %c0_14 = arith.constant 0 : index
    %c0_15 = arith.constant 0 : index
    %66 = vector.load %arg2[%c0_14, %c0_15] : memref<22x128xbf16, #tpu.memory_space<vmem>>, vector<22x128xbf16>
    %cst_16 = arith.constant dense<0.000000e+00> : vector<8x128xf32>
    %67 = tpu.matmul %65, %66, %cst_16 {dimension_numbers = #tpu.dot_dimension_numbers<[1], [0], [0], [1], [0, 0, 1, 1], [], []>} : vector<8x22xbf16>, vector<22x128xbf16>, vector<8x128xf32> -> vector<8x128xf32>
    %c0_17 = arith.constant 0 : index
    %c0_18 = arith.constant 0 : index
    %68 = vector.load %arg3[%c0_17, %c0_18] : memref<8x128xf32, #tpu.memory_space<vmem>>, vector<8x128xf32>
    tpu.vector_store %arg3[%c0_17, %c0_18], %67 {strides = array<i32>} : memref<8x128xf32, #tpu.memory_space<vmem>>, vector<8x128xf32>,
    return
  }
  func.func @transform_0(%arg0: i32) -> (i32, i32) {
    %c0_i32 = arith.constant 0 : i32
    %c0_i32_0 = arith.constant 0 : i32
    return %arg0, %c0_i32 : i32, i32
  }
  func.func @transform_1(%arg0: i32) -> (i32, i32) {
    %c0_i32 = arith.constant 0 : i32
    %c0_i32_0 = arith.constant 0 : i32
    %c0_i32_1 = arith.constant 0 : i32
    return %c0_i32, %c0_i32_0 : i32, i32
  }
  func.func @transform_2(%arg0: i32) -> (i32, i32) {
    %c0_i32 = arith.constant 0 : i32
    %c0_i32_0 = arith.constant 0 : i32
    return %arg0, %c0_i32 : i32, i32
  }
}

</mosaic_0001>

<bundles_post_ra>
// kernel: compute_cost_matrix.1
= control target key start
LH: loop header
LB: loop body
LE: loop exit
PB: predicated region body
PF: predicated region fallthrough
CT: control target
= control target key end

     0   :  { %7 = vsyncpa [#allocation3], 0  ;;  %s567_s0 = inlined_call_operand.vmem [shape: f32[16,22], index: 0, kind: input, shape index: {}]   ;;  %s568_s1 = inlined_call_operand.vmem [shape: bf16[22,128], index: 1, kind: input, shape index: {}]   ;;  %s569_s2 = inlined_call_operand.hbm [shape: f32[16,128], index: 2, kind: output, shape index: {}]  }
   0x1   :  { %9 = vsyncpa [#allocation3 + $0x1], 0  ;;  %s441_s9 = smov 0   ;;  %s443_s10 = smov 0  }
   0x2   :  { %s445_s11 = smov 0   ;;  %s447_s12 = smov 0  }
   0x3 LB: > { %s462_s13 = sadd.s32 4294967295, %s424_s12   ;;  %s299_s14 = sadd.s32 4294967294, %s424_s12   ;;  %s424_s12 = sphi %s447_s12, %s579_s12   ;;  %s420_s11 = sphi %s445_s11, %s578_s11   ;;  %s416_s10 = sphi %s443_s10, %s577_s10   ;;  %s412_s9 = sphi %s441_s9, %s576_s9  }
   0x4   : > { %s466_s15 = sadd.s32 1, %s424_s12   ;;  %s69_s16 = sadd.s32 1, %s420_s11 }
   0x5   : > { %s66_s17 = ssub.s32 %s424_s12, %s466_s15  ;;  %p79_p0 = scmp.ne.s32.totalorder %s420_s11, %s416_s10 }
   0x6   : > { %p67_p1 = scmp.eq.s32.totalorder %s66_s17, 0  ;;  %p80_p2 = scmp.eq.s32.totalorder %s462_s13, 1 }
   0x7   : > { %p85_p3 = scmp.ne.s32.totalorder %s416_s10, %s412_s9  ;;  %p86_p4 = scmp.eq.s32.totalorder %s299_s14, 1 }
   0x8   : > { %s477_s18 = scalar_select %p67_p1, %s420_s11, %s69_s16  }
   0x9   : > { %p479_p5 = por %p80_p2, %p79_p0  ;;  %p483_p6 = por %p86_p4, %p85_p3 }
   0xa   : > { %p302_p7 = scmp.ge.s32.totalorder %s424_s12, 1  ;;  %p114_p8 = scmp.lt.s32.totalorder %s424_s12, 3 }
   0xc   : > { %p115_p9 = pnand %p302_p7, %p114_p8 }
   0xd   : > { %p135_p10 = scmp.lt.s32.totalorder (!%p115_p9), %s462_s13, 1  ;;  %s132_s30 = sand.u32 (!%p115_p9), 1, %s416_s10  }
   0xe   : > { %118 = sbr.rel (%p115_p9) target bundleno = 435 (0x1b3), region = 28  ;;  %s311_s3 = sshll.u32 (!%p115_p9), %s462_s13, 3 }
   0xf   : > { %s303_s4 = sshll.u32 (!%p115_p9), %s132_s30, 3  ;;  %s235_s7 = scalar_lea.hbm (!%p115_p9), %s569_s2, %s311_s3 }
  0x10   : > { %s134_s8 = scalar_lea.vmem (!%p115_p9), [#allocation2], %s303_s4  ;;  %s239_s16 = sshll.u32 (!%p115_p9), %s235_s7, 4  ;;  %s240_s16 = int_to_ptr.hbm [resolvable:$true] %s239_s16 }
  0x11   : > { %s237_s14 = sshll.u32 (!%p115_p9), %s134_s8, 4  ;;  %s225_s17 = scalar_lea.sflag (!%p115_p9), [#allocation3], %s132_s30  ;;  %s238_s14 = int_to_ptr.vmem [resolvable:$true] %s237_s14 }
  0x12   : > { %s382_s24 = scalar_lea.hbm (!%p115_p9), %s569_s2, 16 }
  0x13   : > { %v141_v0 = vlaneseq  ;;  %s136_s21 = scalar_select %p135_p10, %s462_s13, 1  ;;  %vm147_vm2 = vcmask 179200   ;;  %v193_v26 = vld [vmem:[%s568_s1 + $0x8] sm:$0x7]  ;;  %vm206_vm8 = vcmask 1042432   ;;  %v314_v30 = vld [vmem:[%s568_s1] sm:$0xff] }
  0x14   : > { %v199_v27 = vunpack.c.l.b16 %v193_v26 }
  0x15   : > { %v142_v1 = vand.u32 127, %v141_v0  ;;  %s304_s22 = sshll.u32 %s136_s21, 3  ;;  %s376_s21 = sshra.s32 %s240_s16, 4  ;;  %s377_s21 = int_to_ptr.hbm [resolvable:$true] %s376_s21 }
  0x16   : > { %s138_s25 = scalar_lea.vmem %s567_s0, %s304_s22  ;;  %v201_v28 = vpack.c.b16 %v199_v27, %v199_v27  ;;  %s378_s22 = scalar_lea.hbm %s377_s21, 8 }
  0x17   : > { %vm144_vm0 = vcmp.lt.s32.totalorder %v142_v1, 9  ;;  %vm160_vm1 = vcmp.ge.s32.totalorder %v142_v1, 15  ;;  %vm152_vm3 = vcmp.ge.s32.totalorder %v142_v1, 9  ;;  %vm153_vm4 = vcmp.lt.s32.totalorder %v142_v1, 15  ;;  %v140_v2 = vld [vmem:[%s138_s25] sm:$0xff]  ;;  %p379_p11 = scmp.ne.s32.totalorder %s377_s21, %s378_s22  ;;  %p383_p0 = scmp.lt.s32.totalorder %s377_s21, %s569_s2 }
  0x18   : > { %vm161_vm5 = vcmp.lt.s32.totalorder %v142_v1, 22  ;;  %v146_v4 = vsel %vm144_vm0, %v140_v2, -1e+30  ;;  %vm502_vm7 = vmand %vm152_vm3, %vm153_vm4  ;;  %v208_v29 = vsel %vm206_vm8, %v201_v28, 0  ;;  %p384_p1 = scmp.lt.s32.totalorder %s382_s24, %s378_s22 }
  0x19   : > { %vm494_vm6 = vmand %vm160_vm1, %vm161_vm5  ;;  %v148_v6 = vsel %vm147_vm2, %v146_v4, -inf  ;;  %v155_v9 = vsel %vm502_vm7, %v140_v2, -1e+30  ;;  %216 = vmatpush.bf16.msra.mxu0 %v208_v29  ;;  %p380_p12 = pnand %p379_p11, %p479_p5 }
  0x1a   : > { %v163_v5 = vsel %vm494_vm6, %v140_v2, -1e+30  ;;  %149 = vmax.xlane.f32.xlu0 %v148_v6  ;;  %v156_v10 = vsel %vm147_vm2, %v155_v9, -inf  ;;  %p385_p2 = por %p384_p1, %p383_p0 }
  0x1b   : > { %v164_v8 = vsel %vm147_vm2, %v163_v5, -inf  ;;  %p381_p13 = pneg %p380_p12 }
  0x1c   : > { %165 = vmax.xlane.f32.xlu1 %v164_v8 }
  0x1d   : > { %217 = vmatpush.bf16.msra.mxu0 %v314_v30  ;;  %p386_p3 = pnand %p385_p2, %p381_p13 }
  0x22   : > { %157 = vmax.xlane.f32.xlu0 %v156_v10 }
  0x8d   : > { %v150_v11 = vpop.xlane.xlu0 %149 }
  0x8e   : > { %v151_v13 = vsel %vm144_vm0, %v150_v11, 0.0 }
  0x8f   : > { %v166_v12 = vpop.xlane.xlu1 %165 }
  0x95   : > { %v158_v14 = vpop.xlane.xlu0 %157 }
  0x96   : > { %v159_v15 = vsel %vm502_vm7, %v158_v14, %v151_v13 }
  0x97   : > { %v167_v16 = vsel %vm494_vm6, %v166_v12, %v159_v15 }
  0x98   : > { %v168_v17 = vsub.f32 %v140_v2, %v167_v16 }
  0x9a   : > { %v169_v18 = vmul.f32 1.442695, %v168_v17 }
  0x9c   : > { %354 = vpow2.f32 %v169_v18 }
  0xa2   : > { %v355_v19 = vpop.eup %354 }
  0xa3   : > { %v177_v20 = vsel %vm502_vm7, %v355_v19, 0.0  ;;  %v171_v21 = vsel %vm144_vm0, %v355_v19, 0.0  ;;  %v183_v24 = vsel %vm494_vm6, %v355_v19, 0.0 }
  0xa4   : > { %v178_v22 = vsel %vm147_vm2, %v177_v20, 0.0  ;;  %v172_v23 = vsel %vm147_vm2, %v171_v21, 0.0  ;;  %v184_v25 = vsel %vm147_vm2, %v183_v24, 0.0 }
  0xa5   : > { %179 = vadd.xlane.f32.xlu2 %v178_v22  ;;  %173 = vadd.xlane.f32.xlu1 %v172_v23 }
  0xad   : > { %185 = vadd.xlane.f32.xlu2 %v184_v25 }
 0x118   : > { %v180_v31 = vpop.xlane.xlu2 %179  ;;  %v174_v32 = vpop.xlane.xlu1 %173 }
 0x119   : > { %356 = vrcp.f32 %v174_v32 }
 0x11a   : > { %358 = vrcp.f32 %v180_v31 }
 0x11f   : > { %v357_v34 = vpop.eup %356 }
 0x120   : > { %v186_v33 = vpop.xlane.xlu2 %185  ;;  %v359_v35 = vpop.eup %358  ;;  %v176_v36 = vsel %vm144_vm0, %v357_v34, 0.0 }
 0x121   : > { %360 = vrcp.f32 %v186_v33  ;;  %v182_v38 = vsel %vm502_vm7, %v359_v35, %v176_v36 }
 0x127   : > { %v361_v37 = vpop.eup %360 }
 0x128   : > { %v188_v39 = vsel %vm494_vm6, %v361_v37, %v182_v38 }
 0x129   : > { %v189_v40 = vmul.f32 %v355_v19, %v188_v39 }
 0x12b   : > { %v190_v41 = vpack.c.bf16 %v189_v40, %v189_v40 }
 0x12d   : > { %309 = vmatmul.msk.bf16.vlgmr.msra.gmra.mxu0 %vm147_vm2, %v190_v41 }
 0x1aa   : > { %v219_v42 = vpop.f32.mrf.mxu0 }
 0x1ab   : > { %223 = vst [vmem:[%s134_s8] sm:$0xff] %v219_v42 }
 0x1ac   : > { %389 = shalt.err (!%p386_p3)
}
 0x1ad   : > { %315 = dma.vmem_to_hbm [thread:$0]  (%p479_p5), %s238_s14, 128, %s240_s16, %s225_s17  }
 0x1b2   : > { %v221_v43 = vpop.f32.mrf.mxu0 }
 0x1b3 PF: > { %p321_p4 = scmp.ge.s32.totalorder %s424_s12, 2  ;;  %s251_s27 = sand.u32 1, %s412_s9  }
 0x1b4   : > { %s252_s28 = scalar_lea.sflag [#allocation3], %s251_s27 }
 0x1b5   : > { %p318_p7 = pnand %p321_p4, %p483_p6 }
 0x1b7   : > { %p319_p8 = pneg %p318_p7 }
 0x1b9   : > { %407 = dma.done.wait (%p319_p8), %s252_s28, 128  }
 0x1ba   : > { %409 = vsyncadd (%p319_p8), %s252_s28, 4294967168  ;;  %p12_p9 = scmp.ge.s32.totalorder %s466_s15, 4   ;;  %s576_s9 = smov %s416_s10 }
 0x1bb   : > { %s577_s10 = smov %s420_s11  ;;  %s578_s11 = smov %s477_s18 }
 0x1bc   : > { %s579_s12 = smov %s466_s15  ;;  %14 = sbr.rel (!%p12_p9) target bundleno = 3 (0x3), region = 63 }
 0x1c1   :  { %258 = vsyncpa [#allocation3], 1 }
 0x1c2   :  { %260 = vsyncpa [#allocation3 + $0x1], 1 }

</bundles_post_ra>
